<compile_context>
chip_gen: v6e
topology: v6e:2x2x1
jax: 0.10.0
libtpu: 0.0.40
codegen_flags: <defaults>
</compile_context>

<pallas_src>
import functools

import jax
import jax.numpy as jnp
from jax.experimental import pallas as pl
from jax.experimental.pallas import tpu as pltpu


# ---------------------------------------------------------------------------
# Pallas kernels
# ---------------------------------------------------------------------------

def _mm_bias_act_kernel(x_ref, w_ref, bias_ref, o_ref, acc_ref, *, act):
    """y = act(x @ w + bias); K is the innermost (arbitrary) grid axis."""
    @pl.when(pl.program_id(2) == 0)
    def _():
        acc_ref[...] = jnp.zeros_like(acc_ref)

    acc_ref[...] += jnp.dot(x_ref[...], w_ref[...],
                            preferred_element_type=jnp.float32)

    @pl.when(pl.program_id(2) == pl.num_programs(2) - 1)
    def _():
        y = acc_ref[...] + bias_ref[...]
        if act == "relu":
            y = jnp.maximum(y, 0.0)
        o_ref[...] = y.astype(o_ref.dtype)


def _choose_tn(n):
    # Keep >= 2 steps along N when N is large so v7x's 2 TensorCores share work.
    if n <= 512:
        return n
    for t in (1024, 512, 256, 128):
        if t <= n // 2 and n % t == 0:
            return t
    return n


def _choose_tk(k):
    for t in (1024, 768, 512, 256, 128):
        if k % t == 0:
            return t
    return k


def matmul_fused(x, w, bias, act="none", out_dtype=jnp.bfloat16):
    """(M,K)@(K,N) + per-output-channel bias + activation; bf16 in, f32 accumulate."""
    M, K = x.shape
    K2, N = w.shape
    assert K == K2
    tm, tn, tk = M, _choose_tn(N), _choose_tk(K)
    assert N % tn == 0 and K % tk == 0

    x = x.astype(jnp.bfloat16)
    w = w.astype(jnp.bfloat16)
    bias2 = bias.reshape(1, N).astype(jnp.float32)
    kernel = functools.partial(_mm_bias_act_kernel, act=act)

    return pl.pallas_call(
        kernel,
        out_shape=jax.ShapeDtypeStruct((M, N), out_dtype),
        grid_spec=pltpu.PrefetchScalarGridSpec(
            num_scalar_prefetch=0,
            grid=(M // tm, N // tn, K // tk),
            in_specs=[
                pl.BlockSpec((tm, tk), lambda i, j, k: (i, k)),
                pl.BlockSpec((tk, tn), lambda i, j, k: (k, j)),
                pl.BlockSpec((1, tn), lambda i, j, k: (0, j)),
            ],
            out_specs=pl.BlockSpec((tm, tn), lambda i, j, k: (i, j)),
            scratch_shapes=[pltpu.VMEM((tm, tn), jnp.float32)],
        ),
        compiler_params=pltpu.CompilerParams(
            dimension_semantics=("parallel", "parallel", "arbitrary")),
    )(x, w, bias2)


def _conv3_se_kernel(x_ref, w_ref, b3_ref, id_ref, w1_ref, b1_ref, w2_ref, b2_ref,
                     o_ref, acc_ref, *, batch):
    """Fused: conv3(1x1)+BN -> SE(pool->fc->relu->fc->sigmoid) -> scale -> +id -> relu.

    Grid is the K (conv3 reduction) axis; the f32 accumulator stays resident and the
    whole SE tail + residual runs at the final K step, all in VMEM.
    """
    k = pl.program_id(0)

    @pl.when(k == 0)
    def _():
        acc_ref[...] = jnp.zeros_like(acc_ref)

    acc_ref[...] += jnp.dot(x_ref[...], w_ref[...],
                            preferred_element_type=jnp.float32)

    @pl.when(k == pl.num_programs(0) - 1)
    def _():
        M, C = o_ref.shape
        hw = M // batch
        y = acc_ref[...] + b3_ref[...]                        # (M, C) f32, BN folded
        y3 = y.reshape(batch, hw, C)
        pooled = jnp.mean(y3, axis=1)                         # (batch, C)
        hid = jnp.dot(pooled.astype(jnp.bfloat16), w1_ref[...],
                      preferred_element_type=jnp.float32) + b1_ref[...]
        hid = jnp.maximum(hid, 0.0)
        se = jnp.dot(hid.astype(jnp.bfloat16), w2_ref[...],
                     preferred_element_type=jnp.float32) + b2_ref[...]
        se = jax.nn.sigmoid(se)                               # (batch, C)
        out = y3 * se[:, None, :] + id_ref[...].reshape(batch, hw, C).astype(jnp.float32)
        o_ref[...] = jnp.maximum(out, 0.0).reshape(M, C).astype(o_ref.dtype)


def conv3_se_residual(x2, w3, b3, identity, se_w1, se_b1, se_w2, se_b2, *, batch):
    """relu(SE(bn3(conv3(x2))) * bn3(conv3(x2)) + identity) in one pallas_call."""
    M, K = x2.shape
    C = w3.shape[1]
    hidden = se_w1.shape[1]
    tk = 512 if K % 512 == 0 else K          # 2 MB bf16 weight chunks, 2 pipeline steps
    kernel = functools.partial(_conv3_se_kernel, batch=batch)

    return pl.pallas_call(
        kernel,
        out_shape=jax.ShapeDtypeStruct((M, C), jnp.bfloat16),
        grid_spec=pltpu.PrefetchScalarGridSpec(
            num_scalar_prefetch=0,
            grid=(K // tk,),
            in_specs=[
                pl.BlockSpec((M, tk), lambda k: (0, k)),        # conv2 output
                pl.BlockSpec((tk, C), lambda k: (k, 0)),        # conv3 weight (BN folded)
                pl.BlockSpec((1, C), lambda k: (0, 0)),         # bn3 shift
                pl.BlockSpec((M, C), lambda k: (0, 0)),         # identity / downsample
                pl.BlockSpec((C, hidden), lambda k: (0, 0)),    # se fc1 weight
                pl.BlockSpec((1, hidden), lambda k: (0, 0)),    # se fc1 bias
                pl.BlockSpec((hidden, C), lambda k: (0, 0)),    # se fc2 weight
                pl.BlockSpec((1, C), lambda k: (0, 0)),         # se fc2 bias
            ],
            out_specs=pl.BlockSpec((M, C), lambda k: (0, 0)),
            scratch_shapes=[pltpu.VMEM((M, C), jnp.float32)],
        ),
        compiler_params=pltpu.CompilerParams(
            dimension_semantics=("arbitrary",)),
    )(x2.astype(jnp.bfloat16),
      w3.astype(jnp.bfloat16),
      b3.reshape(1, C).astype(jnp.float32),
      identity.astype(jnp.bfloat16),
      se_w1.astype(jnp.bfloat16), se_b1.reshape(1, hidden).astype(jnp.float32),
      se_w2.astype(jnp.bfloat16), se_b2.reshape(1, C).astype(jnp.float32))


def _head_kernel(x_ref, w_ref, b_ref, o_ref):
    """Fused classifier head: global spatial mean + fc (output padded to 128 lanes)."""
    pooled = jnp.mean(x_ref[...].astype(jnp.float32), axis=1)   # (B, C)
    y = jnp.dot(pooled.astype(jnp.bfloat16), w_ref[...],
                preferred_element_type=jnp.float32) + b_ref[...]
    o_ref[...] = y


def head_mean_fc(x_bpc, fc_w_pad, fc_b_pad):
    B, HW, C = x_bpc.shape
    n_pad = fc_w_pad.shape[1]
    return pl.pallas_call(
        _head_kernel,
        out_shape=jax.ShapeDtypeStruct((B, n_pad), jnp.float32),
    )(x_bpc, fc_w_pad.astype(jnp.bfloat16),
      fc_b_pad.reshape(1, n_pad).astype(jnp.float32))


# ---------------------------------------------------------------------------
# Conv wrappers (glue = strided slicing / padding / im2col; matmul in Pallas)
# ---------------------------------------------------------------------------

def conv1x1_bn_act(x, w, shift, stride=1, act="none"):
    if stride != 1:
        x = x[:, ::stride, ::stride, :]
    B, H, W, C = x.shape
    y = matmul_fused(x.reshape(B * H * W, C), w, shift, act)
    return y.reshape(B, H, W, -1)


def conv3x3_bn_act(x, w_mat, shift, act="none"):
    # TODO(synk): im2col is materialized with XLA glue (bf16); an in-kernel tap-indexed
    # gather would avoid the 9x activation copy (modest at these small spatial sizes).
    B, H, W, C = x.shape
    xp = jnp.pad(x, ((0, 0), (1, 1), (1, 1), (0, 0)))
    cols = [xp[:, dh:dh + H, dw:dw + W, :] for dh in range(3) for dw in range(3)]
    xcol = jnp.concatenate(cols, axis=-1)                       # (B, H, W, 9*C)
    y = matmul_fused(xcol.reshape(B * H * W, 9 * C), w_mat, shift, act)
    return y.reshape(B, H, W, -1)


# ---------------------------------------------------------------------------
# SEBlock / SENet forward
# ---------------------------------------------------------------------------

def se_block_forward(x, p):
    identity = x
    out = conv1x1_bn_act(x, p["w1"], p["bn1_shift"], stride=p["stride"], act="relu")
    out = conv3x3_bn_act(out, p["w2"], p["bn2_shift"], act="relu")

    if p["down"] is not None:
        dw, dshift = p["down"]
        identity = conv1x1_bn_act(x, dw, dshift, stride=p["stride"], act="none")

    B, H, W, Cmid = out.shape
    Bi, Hi, Wi, Ci = identity.shape
    y = conv3_se_residual(out.reshape(B * H * W, Cmid),
                          p["w3"], p["bn3_shift"],
                          identity.reshape(Bi * Hi * Wi, Ci),
                          p["se_w1"], p["se_b1"], p["se_w2"], p["se_b2"],
                          batch=B)
    return y.reshape(B, H, W, -1)


def senet_forward(x_nchw, params):
    x = jnp.transpose(x_nchw, (0, 2, 3, 1)).astype(jnp.bfloat16)  # NCHW -> NHWC, bf16
    for p in params["blocks"]:
        x = se_block_forward(x, p)
    B, H, W, C = x.shape
    logits_pad = head_mean_fc(x.reshape(B, H * W, C),
                              params["fc_w_pad"], params["fc_b_pad"])
    return logits_pad[:, :params["num_classes"]]


# ---------------------------------------------------------------------------
# Deterministic parameter init (shapes from the PyTorch module's __init__)
# BN scale is folded into the conv weight columns; weights stored in bf16.
# ---------------------------------------------------------------------------

def _init_bn(key, c):
    k1, k2, k3, k4 = jax.random.split(key, 4)
    gamma = 1.0 + 0.1 * jax.random.normal(k1, (c,), jnp.float32)
    beta = 0.1 * jax.random.normal(k2, (c,), jnp.float32)
    mean = 0.1 * jax.random.normal(k3, (c,), jnp.float32)
    var = jnp.abs(1.0 + 0.1 * jax.random.normal(k4, (c,), jnp.float32))
    scale = gamma / jnp.sqrt(var + 1e-5)
    shift = beta - mean * scale
    return scale, shift


def _init_se_block(key, cin, filters, stride):
    f1, f2, f3 = filters
    keys = jax.random.split(key, 12)

    def w(k, fan_in, shape):
        return jax.random.normal(k, shape, jnp.float32) / jnp.sqrt(float(fan_in))

    p = {"stride": stride}

    # conv1 (1x1) + bn1 -- fold BN scale into weight columns.
    w1 = w(keys[0], cin, (cin, f1))
    s1, p["bn1_shift"] = _init_bn(keys[1], f1)
    p["w1"] = (w1 * s1[None, :]).astype(jnp.bfloat16)

    # conv2 (3x3, HWIO) + bn2 -> (9*f1, f2) matmul weight (tap order matches im2col).
    w2 = w(keys[2], 9 * f1, (3, 3, f1, f2))
    s2, p["bn2_shift"] = _init_bn(keys[3], f2)
    p["w2"] = (w2 * s2[None, None, None, :]).reshape(9 * f1, f2).astype(jnp.bfloat16)

    # conv3 (1x1) + bn3
    w3 = w(keys[4], f2, (f2, f3))
    s3, p["bn3_shift"] = _init_bn(keys[5], f3)
    p["w3"] = (w3 * s3[None, :]).astype(jnp.bfloat16)

    hidden = f3 // 16
    p["se_w1"] = w(keys[6], f3, (f3, hidden)).astype(jnp.bfloat16)
    p["se_b1"] = 0.01 * jax.random.normal(keys[7], (hidden,), jnp.float32)
    p["se_w2"] = w(keys[8], hidden, (hidden, f3)).astype(jnp.bfloat16)
    p["se_b2"] = 0.01 * jax.random.normal(keys[9], (f3,), jnp.float32)

    if stride != 1 or cin != f3:
        dw = w(keys[10], cin, (cin, f3))
        dscale, dshift = _init_bn(keys[11], f3)
        p["down"] = ((dw * dscale[None, :]).astype(jnp.bfloat16), dshift)
    else:
        p["down"] = None
    return p


def init_senet(key, num_classes, block_config):
    n_blocks = block_config[1]
    keys = jax.random.split(key, n_blocks + 2)
    blocks = []
    cin = 768
    filters = (1024, 1024, 2048)
    for i in range(n_blocks):
        stride = 2 if i == 0 else 1
        blocks.append(_init_se_block(keys[i], cin, filters, stride))
        cin = filters[2]
    fc_w = jax.random.normal(keys[-2], (2048, num_classes), jnp.float32) / jnp.sqrt(2048.0)
    fc_b = 0.01 * jax.random.normal(keys[-1], (num_classes,), jnp.float32)
    # Pad fc output to a multiple of 128 lanes (unmasked stores); sliced back later.
    n_pad = ((num_classes + 127) // 128) * 128
    fc_w_pad = jnp.zeros((2048, n_pad), jnp.float32).at[:, :num_classes].set(fc_w)
    fc_b_pad = jnp.zeros((n_pad,), jnp.float32).at[:num_classes].set(fc_b)
    return {"blocks": blocks,
            "fc_w_pad": fc_w_pad.astype(jnp.bfloat16),
            "fc_b_pad": fc_b_pad,
            "num_classes": num_classes}


# ---------------------------------------------------------------------------

if __name__ == "__main__":
    key = jax.random.PRNGKey(0)
    kx, kp = jax.random.split(key)

    # Forward implies (B, 768, H, W) input; keep spatial small.
    B, C, H, W = 2, 768, 8, 8
    num_classes = 10
    block_config = [1, 2]          # conv3 stage uses block_config[1] = 2 SEBlocks

    x = jax.random.normal(kx, (B, C, H, W), jnp.float32)
    params = init_senet(kp, num_classes, block_config)

    out = senet_forward(x, params)
    out = jax.block_until_ready(out)
    assert out.shape == (B, num_classes), out.shape
    assert bool(jnp.all(jnp.isfinite(out)))
    print("KERNEL_OK")
</pallas_src>

<mosaic_0001>
module attributes {stable_mosaic.version = 11 : i64} {
  func.func @_mm_bias_act_kernel(%arg0: i32, %arg1: i32, %arg2: i32, %arg3: memref<32x768xbf16, #tpu.memory_space<vmem>>, %arg4: memref<768x512xbf16, #tpu.memory_space<vmem>>, %arg5: memref<1x512xf32, #tpu.memory_space<vmem>>, %arg6: memref<32x512xbf16, #tpu.memory_space<vmem>>, %arg7: memref<32x512xf32, #tpu.memory_space<vmem>>) attributes {dimension_semantics = [#tpu.dimension_semantics<parallel>, #tpu.dimension_semantics<parallel>, #tpu.dimension_semantics<arbitrary>], iteration_bounds = array<i64: 1, 2, 1>, scalar_prefetch = 0 : i64, scratch_operands = 1 : i64, tpu.core_type = #tpu.core_type<tc>, window_params = [{transform_indices = @transform_0, window_bounds = array<i64: 32, 768>}, {transform_indices = @transform_1, window_bounds = array<i64: 768, 512>}, {transform_indices = @transform_2, window_bounds = array<i64: 1, 512>}, {transform_indices = @transform_3, window_bounds = array<i64: 32, 512>}]} {
    %c0_i32 = arith.constant 0 : i32
    %0 = arith.cmpi eq, %arg2, %c0_i32 : i32
    %1 = arith.extui %0 : i1 to i32
    %c0_i32_0 = arith.constant 0 : i32
    %2 = arith.cmpi ne, %1, %c0_i32_0 : i32
    scf.if %2 {
      %cst_10 = arith.constant 0.000000e+00 : f32
      %12 = vector.broadcast %cst_10 : f32 to vector<32x512xf32>
      %c0_11 = arith.constant 0 : index
      %c0_12 = arith.constant 0 : index
      %13 = vector.load %arg7[%c0_11, %c0_12] : memref<32x512xf32, #tpu.memory_space<vmem>>, vector<32x512xf32>
      tpu.vector_store %arg7[%c0_11, %c0_12], %12 {strides = array<i32>} : memref<32x512xf32, #tpu.memory_space<vmem>>, vector<32x512xf32>,
    } else {
    }
    %c0 = arith.constant 0 : index
    %c0_1 = arith.constant 0 : index
    %3 = vector.load %arg7[%c0, %c0_1] : memref<32x512xf32, #tpu.memory_space<vmem>>, vector<32x512xf32>
    %c0_2 = arith.constant 0 : index
    %c0_3 = arith.constant 0 : index
    %4 = vector.load %arg3[%c0_2, %c0_3] : memref<32x768xbf16, #tpu.memory_space<vmem>>, vector<32x768xbf16>
    %c0_4 = arith.constant 0 : index
    %c0_5 = arith.constant 0 : index
    %5 = vector.load %arg4[%c0_4, %c0_5] : memref<768x512xbf16, #tpu.memory_space<vmem>>, vector<768x512xbf16>
    %cst = arith.constant dense<0.000000e+00> : vector<32x512xf32>
    %6 = tpu.matmul %4, %5, %cst {dimension_numbers = #tpu.dot_dimension_numbers<[1], [0], [0], [1], [0, 0, 1, 1], [], []>} : vector<32x768xbf16>, vector<768x512xbf16>, vector<32x512xf32> -> vector<32x512xf32>
    %7 = arith.addf %3, %6 : vector<32x512xf32>
    %c0_6 = arith.constant 0 : index
    %c0_7 = arith.constant 0 : index
    %8 = vector.load %arg7[%c0_6, %c0_7] : memref<32x512xf32, #tpu.memory_space<vmem>>, vector<32x512xf32>
    tpu.vector_store %arg7[%c0_6, %c0_7], %7 {strides = array<i32>} : memref<32x512xf32, #tpu.memory_space<vmem>>, vector<32x512xf32>,
    %c0_i32_8 = arith.constant 0 : i32
    %9 = arith.cmpi eq, %arg2, %c0_i32_8 : i32
    %10 = arith.extui %9 : i1 to i32
    %c0_i32_9 = arith.constant 0 : i32
    %11 = arith.cmpi ne, %10, %c0_i32_9 : i32
    scf.if %11 {
      %c0_10 = arith.constant 0 : index
      %c0_11 = arith.constant 0 : index
      %12 = vector.load %arg7[%c0_10, %c0_11] : memref<32x512xf32, #tpu.memory_space<vmem>>, vector<32x512xf32>
      %c0_12 = arith.constant 0 : index
      %c0_13 = arith.constant 0 : index
      %13 = vector.load %arg5[%c0_12, %c0_13] : memref<1x512xf32, #tpu.memory_space<vmem>>, vector<1x512xf32>
      %14 = vector.broadcast %13 : vector<1x512xf32> to vector<32x512xf32>
      %15 = arith.addf %12, %14 : vector<32x512xf32>
      %cst_14 = arith.constant 0.000000e+00 : f32
      %16 = vector.broadcast %cst_14 : f32 to vector<32x512xf32>
      %17 = arith.maximumf %15, %16 : vector<32x512xf32>
      %18 = arith.truncf %17 : vector<32x512xf32> to vector<32x512xbf16>
      %c0_15 = arith.constant 0 : index
      %c0_16 = arith.constant 0 : index
      %19 = vector.load %arg6[%c0_15, %c0_16] : memref<32x512xbf16, #tpu.memory_space<vmem>>, vector<32x512xbf16>
      tpu.vector_store %arg6[%c0_15, %c0_16], %18 {strides = array<i32>} : memref<32x512xbf16, #tpu.memory_space<vmem>>, vector<32x512xbf16>,
    } else {
    }
    return
  }
  func.func @transform_0(%arg0: i32, %arg1: i32, %arg2: i32) -> (i32, i32) {
    %c0_i32 = arith.constant 0 : i32
    return %arg0, %arg2 : i32, i32
  }
  func.func @transform_1(%arg0: i32, %arg1: i32, %arg2: i32) -> (i32, i32) {
    %c0_i32 = arith.constant 0 : i32
    return %arg2, %arg1 : i32, i32
  }
  func.func @transform_2(%arg0: i32, %arg1: i32, %arg2: i32) -> (i32, i32) {
    %c0_i32 = arith.constant 0 : i32
    %c0_i32_0 = arith.constant 0 : i32
    return %c0_i32, %arg1 : i32, i32
  }
  func.func @transform_3(%arg0: i32, %arg1: i32, %arg2: i32) -> (i32, i32) {
    %c0_i32 = arith.constant 0 : i32
    return %arg0, %arg1 : i32, i32
  }
}

</mosaic_0001>

<bundles_post_ra>
// kernel: tpu_custom_call.1
= control target key start
LH: loop header
LB: loop body
LE: loop exit
PB: predicated region body
PF: predicated region fallthrough
CT: control target
= control target key end

     0   :  { %8 = vsyncpa [#allocation4], 0  ;;  %s3470_s0 = inlined_call_operand.hbm [shape: bf16[32,768], index: 0, kind: input, shape index: {}]   ;;  %s3471_s1 = inlined_call_operand.hbm [shape: bf16[768,1024], index: 1, kind: input, shape index: {}]   ;;  %s3472_s2 = inlined_call_operand.hbm [shape: f32[1,1024], index: 2, kind: input, shape index: {}]   ;;  %s3473_s3 = inlined_call_operand.hbm [shape: bf16[32,1024], index: 3, kind: output, shape index: {}]  }
   0x1   :  { %9 = vsyncpa [#allocation7], 0 }
   0x2   :  { %11 = vsyncpa [#allocation7 + $0x1], 0 }
   0x3   :  { %12 = vsyncpa [#allocation5], 0 }
   0x4   :  { %14 = vsyncpa [#allocation5 + $0x1], 0  ;;  %s3004_s12 = smov 0   ;;  %s3006_s13 = smov 0  }
   0x5   :  { %s3008_s14 = smov 0   ;;  %s3010_s15 = smov 0  }
   0x6   :  { %s3012_s16 = smov 0   ;;  %s3014_s17 = smov 0  }
   0x7 LB: > { %s35_s18 = sadd.s32 1, %s2966_s16  ;;  %s76_s19 = sadd.s32 1, %s2958_s14  ;;  %s2970_s17 = sphi %s3014_s17, %s20_s17   ;;  %s2966_s16 = sphi %s3012_s16, %s3493_s16   ;;  %s2962_s15 = sphi %s3010_s15, %s3492_s15   ;;  %s2958_s14 = sphi %s3008_s14, %s3491_s14   ;;  %s2954_s13 = sphi %s3006_s13, %s3490_s13   ;;  %s2950_s12 = sphi %s3004_s12, %s3489_s12  }
   0x8   : > { %p37_p0 = scmp.ge.s32.totalorder %s35_s18, 2  ;;  %p83_p1 = scmp.ne.s32.totalorder %s2958_s14, %s2954_s13 }
   0x9   : > { %p84_p2 = scmp.eq.s32.totalorder %s2970_s17, 0  ;;  %p2438_p5 = scmp.lt.s32.totalorder %s2970_s17, 2 }
   0xa   : > { %s3495_s18 = smov (%p37_p0, %s35_s18), 0  ;;  %s186_s21 = sand.u32 1, %s2970_s17  }
   0xb   : > { %p85_p4 = por %p84_p2, %p83_p1  ;;  %s72_s20 = ssub.s32 %s2966_s16, %s3495_s18 }
   0xc   : > { %p74_p6 = scmp.eq.s32.totalorder %s72_s20, 0  ;;  %s188_s22 = sand.u32 1, %s2958_s14  }
   0xd   : > { %s2399_s23 = sshll.u32 %s2966_s16, 8  ;;  %s2410_s25 = smul.u32 1536, %s188_s22 }
   0xe   : > { %s3052_s24 = scalar_select %p74_p6, %s2958_s14, %s76_s19  }
   0xf   : > { %s199_s28 = scalar_lea.hbm %s3471_s1, %s2399_s23  ;;  %p3059_p7 = pnand %p2438_p5, %p85_p4 }
  0x10   : > { %s190_s30 = scalar_lea.vmem [#allocation6], %s2410_s25  ;;  %s3063_s5 = scalar_lea.sflag [#allocation7], %s186_s21 }
  0x11   : > { %s200_s4 = sshll.u32 %s190_s30, 4  ;;  %p3475_p8 = pneg %p3059_p7  ;;  %s201_s4 = int_to_ptr.vmem [resolvable:$true] %s200_s4 }
  0x12   : > { %s2817_s6 = scalar_lea.vmem %s201_s4, 24576  ;;  %s2972_s7 = smov [#allocation6]  }
  0x13   : > { %p2818_p9 = scmp.ne.s32.totalorder %s201_s4, %s2817_s6  ;;  %s2822_s8 = sshll.u32 %s2972_s7, 4  ;;  %s2823_s8 = int_to_ptr.vmem [resolvable:$false] %s2822_s8 }
  0x14   : > { %s2824_s9 = scalar_lea.vmem %s2823_s8, 49152  ;;  %p2825_p12 = scmp.lt.s32.totalorder %s201_s4, %s2823_s8 }
  0x15   : > { %p2820_p10 = pnand %p2818_p9, %p3475_p8  ;;  %p2826_p13 = scmp.lt.s32.totalorder %s2824_s9, %s2817_s6 }
  0x17   : > { %p2821_p11 = pneg %p2820_p10  ;;  %p2827_p0 = por %p2826_p13, %p2825_p12 }
  0x19   : > { %p2828_p2 = pnand %p2827_p0, %p2821_p11 }
  0x1b   : > { %2831 = shalt.err (!%p2828_p2)
}
  0x1c   : > { %s2973_s10 = smov 512   ;;  %s2974_s11 = smov 256  }
  0x1d   : > { %s2975_s19 = smov 16   ;;  %s3074_s20 = sadd.s32 4294967295, %s2970_s17  }
  0x1e   : > { %2429 = dma.hbm_to_vmem [thread:$0]  (!%p3059_p7), %s199_s28, 24576, %s201_s4, %s3063_s5, %s2973_s10, %s2974_s11, %s2975_s19  }
  0x1f   : > { %s2169_s21 = sadd.s32 4294967294, %s2970_s17   ;;  %p89_p4 = scmp.ne.s32.totalorder %s2954_s13, %s2950_s12 }
  0x20   : > { %p3474_p5 = scmp.eq.s32.totalorder %s3074_s20, 0  ;;  %p141_p6 = scmp.eq.s32.totalorder %s3074_s20, 1 }
  0x21   : > { %p147_p9 = scmp.eq.s32.totalorder %s2169_s21, 1  ;;  %p2170_p11 = scmp.ge.s32.totalorder %s2970_s17, 1 }
  0x22   : > { %p3083_p10 = por %p3474_p5, %p89_p4  ;;  %p3091_p12 = por %p141_p6, %p83_p1 }
  0x23   : > { %p3095_p13 = por %p147_p9, %p89_p4  ;;  %p154_p0 = scmp.lt.s32.totalorder %s2970_s17, 3 }
  0x24   : > { %s3479_s25 = scalar_select %p3091_p12, 1, 0 }
  0x25   : > { %s3480_s26 = scalar_select %p3095_p13, 1, 0 }
  0x26   : > { %p3100_p2 = pnand %p2170_p11, %p154_p0  ;;  %s2976_s28 = smov [#allocation3]  }
  0x27   : > { %s172_s30 = sshll.u32 %s2976_s28, 4  ;;  %s2175_s4 = sshll.u32 %s188_s22, 2  ;;  %s173_s30 = int_to_ptr.vmem [resolvable:$true] %s172_s30 }
  0x28   : > { %p2422_p3 = pneg %p3100_p2  ;;  %s2400_s6 = sshll.u32 %s2966_s16, 6 }
  0x29   : > { %s3118_s10 = scalar_lea.hbm %s3472_s2, %s2400_s6  ;;  %s214_s11 = scalar_lea.vmem [#allocation8], %s2175_s4 }
  0x2a   : > { %p3111_p1 = pnand %p2422_p3, %p3474_p5  ;;  %s222_s19 = sshll.u32 %s214_s11, 4  ;;  %s223_s19 = int_to_ptr.vmem [resolvable:$true] %s222_s19 }
  0x2b   : > { %s2843_s21 = scalar_lea.vmem %s173_s30, 1536  ;;  %p2851_p0 = scmp.lt.s32.totalorder %s173_s30, %s173_s30 }
  0x2c   : > { %p2834_p4 = pneg %p3111_p1  ;;  %p2844_p6 = scmp.ne.s32.totalorder %s173_s30, %s2843_s21 }
  0x2d   : > { %p2852_p3 = scmp.lt.s32.totalorder %s2843_s21, %s2843_s21 }
  0x2e   : > { %p2846_p9 = pnand %p2844_p6, %p2834_p4 }
  0x2f   : > { %p2853_p5 = por %p2852_p3, %p2851_p0 }
  0x30   : > { %p2847_p11 = pneg %p2846_p9 }
  0x32   : > { %p2854_p8 = pnand %p2853_p5, %p2847_p11 }
  0x34   : > { %2857 = shalt.err (!%p2854_p8)
}
  0x35   : > { %s2977_s22 = smov 384   ;;  %s2978_s28 = smov 24  }
  0x36   : > { %2425 = dma.hbm_to_vmem [thread:$0]  (!%p3111_p1), %s3470_s0, 1536, %s173_s30, [#allocation4], %s2977_s22, %s2977_s22, %s2978_s28  }
  0x37   : > { %s2871_s8 = scalar_lea.vmem %s223_s19, 64  ;;  %p3483_p12 = pneg %p3059_p7 }
  0x38   : > { %p2872_p13 = scmp.ne.s32.totalorder %s223_s19, %s2871_s8  ;;  %s2979_s9 = smov [#allocation8]  }
  0x39   : > { %s2876_s11 = sshll.u32 %s2979_s9, 4  ;;  %s2877_s11 = int_to_ptr.vmem [resolvable:$false] %s2876_s11 }
  0x3a   : > { %p2874_p4 = pnand %p2872_p13, %p3483_p12  ;;  %s2878_s21 = scalar_lea.vmem %s2877_s11, 128 }
  0x3b   : > { %p2879_p8 = scmp.lt.s32.totalorder %s223_s19, %s2877_s11  ;;  %p2880_p5 = scmp.lt.s32.totalorder %s2878_s21, %s2871_s8 }
  0x3c   : > { %p2875_p6 = pneg %p2874_p4 }
  0x3d   : > { %p2881_p9 = por %p2880_p5, %p2879_p8 }
  0x3f   : > { %p2882_p11 = pnand %p2881_p9, %p2875_p6 }
  0x41   : > { %2885 = shalt.err (!%p2882_p11)
}
  0x42   : > { %2432 = dma.hbm_to_vmem [thread:$0]  (!%p3059_p7), %s3118_s10, 64, %s223_s19, %s3063_s5  }
  0x43   : > { %231 = sbr.rel (%p3100_p2) target bundleno = 503 (0x1f7), region = 32  ;;  %p3484_p12 = scmp.eq.s32.totalorder (!%p3100_p2), %s3074_s20, 0 }
  0x48   : > { %2937 = dma.done.wait (%p3484_p12), [#allocation4], 1536   ;;  %p3485_p13 = pmov %p3484_p12 }
  0x49   : > { %s237_s30 = sand.u32 1, %s3074_s20   ;;  %s3142_s7 = sand.u32 1, %s2954_s13  }
  0x4a   : > { %2939 = vsyncadd (%p3485_p13), [#allocation4], 4294965760  ;;  %s2411_s29 = smul.u32 1536, %s3142_s7  ;;  %s238_s22 = scalar_lea.sflag [#allocation7], %s237_s30 }
  0x4c   : > { %s3145_s28 = scalar_lea.vmem [#allocation6], %s2411_s29 }
  0x4d   : > { %2941 = dma.done.wait (%p3083_p10), %s238_s22, 24640  }
  0x4e   : > { %2943 = vsyncadd (%p3083_p10), %s238_s22, 4294942656  ;;  %v2498_v0 = vld [vmem:[%s3145_s28 + $0xe4] ss:$16 sps:$4 sm:$0xff]   ;;  %v2502_v2 = vld [vmem:[%s3145_s28 + $0xe0] ss:$16 sps:$4 sm:$0xff]   ;;  %s2180_s5 = sshll.u32 %s3142_s7, 2 }
  0x4f   : > { %v2500_v1 = vld [vmem:[%s3145_s28 + $0x2e4] ss:$16 sps:$4 sm:$0xff]   ;;  %1545 = vmatprep.subr.bf16.mxu0 %v2498_v0  ;;  %v2503_v3 = vld [vmem:[%s3145_s28 + $0x2e0] ss:$16 sps:$4 sm:$0xff]   ;;  %s250_s20 = scalar_lea.vmem [#allocation8], %s2180_s5  ;;  %s2181_s23 = sshll.u32 %s3142_s7, 6 }
  0x50   : > { %1598 = vmatprep.subr.bf16.mxu1 %v2500_v1  ;;  %v2504_v4 = vld [vmem:[%s3145_s28 + $0xc4] ss:$16 sps:$4 sm:$0xff]   ;;  %1546 = vmatpush1.bf16.msra.mxu0 %v2502_v2  ;;  %v2508_v6 = vld [vmem:[%s3145_s28 + $0xc0] ss:$16 sps:$4 sm:$0xff]   ;;  %s3401_s27 = scalar_lea.vmem [#allocation9], %s2181_s23  ;;  %s2409_s19 = sshll.u32 %s2962_s15, 8 }
  0x51   : > { %1599 = vmatpush1.bf16.msra.mxu1 %v2503_v3  ;;  %v2506_v5 = vld [vmem:[%s3145_s28 + $0x2c4] ss:$16 sps:$4 sm:$0xff]   ;;  %1547 = vmatprep.subr.bf16.mxu0 %v2504_v4  ;;  %v2509_v7 = vld [vmem:[%s3145_s28 + $0x2c0] ss:$16 sps:$4 sm:$0xff]   ;;  %v2605_v3 = vld [vmem:[%s3145_s28 + $0xec] ss:$16 sps:$4 sm:$0xff]   ;;  %s3421_s8 = scalar_lea.hbm %s3473_s3, %s2409_s19 }
  0x52   : > { %1600 = vmatprep.subr.bf16.mxu1 %v2506_v5  ;;  %v2510_v8 = vld [vmem:[%s3145_s28 + $0xa4] ss:$16 sps:$4 sm:$0xff]   ;;  %v2514_v10 = vld [vmem:[%s3145_s28 + $0xa0] ss:$16 sps:$4 sm:$0xff]   ;;  %s2041_s10 = sshll.u32 %s3401_s27, 4  ;;  %s2025_s9 = scalar_lea.sflag [#allocation5], %s3142_s7  ;;  %s3415_s10 = int_to_ptr.vmem [resolvable:$true] %s2041_s10 }
  0x53   : > { %v2512_v9 = vld [vmem:[%s3145_s28 + $0x2a4] ss:$16 sps:$4 sm:$0xff]   ;;  %v2515_v11 = vld [vmem:[%s3145_s28 + $0x2a0] ss:$16 sps:$4 sm:$0xff]   ;;  %s2886_s11 = scalar_lea.vmem %s3415_s10, 1024  ;;  %p3486_p10 = scmp.ne.s32.totalorder %s3479_s25, 0 }
  0x54   : > { %1548 = vmatpush1.bf16.msra.mxu0 %v2508_v6  ;;  %v2516_v12 = vld [vmem:[%s3145_s28 + $0x84] ss:$16 sps:$4 sm:$0xff]   ;;  %v2520_v14 = vld [vmem:[%s3145_s28 + $0x80] ss:$16 sps:$4 sm:$0xff]   ;;  %p2887_p7 = scmp.ne.s32.totalorder %s3415_s10, %s2886_s11  ;;  %s2980_s15 = smov [#allocation9]  }
  0x55   : > { %1601 = vmatpush1.bf16.msra.mxu1 %v2509_v7  ;;  %1549 = vmatprep.subr.bf16.mxu0 %v2510_v8  ;;  %v2518_v13 = vld [vmem:[%s3145_s28 + $0x284] ss:$16 sps:$4 sm:$0xff]   ;;  %v2521_v15 = vld [vmem:[%s3145_s28 + $0x280] ss:$16 sps:$4 sm:$0xff]   ;;  %v2603_v7 = vld [vmem:[%s3145_s28 + $0xe8] ss:$16 sps:$4 sm:$0xff]  }
  0x56   : > { %1602 = vmatprep.subr.bf16.mxu1 %v2512_v9  ;;  %v2522_v16 = vld [vmem:[%s3145_s28 + $0x64] ss:$16 sps:$4 sm:$0xff]   ;;  %v2526_v18 = vld [vmem:[%s3145_s28 + $0x60] ss:$16 sps:$4 sm:$0xff]   ;;  %v2611_v9 = vld [vmem:[%s3145_s28 + $0xcc] ss:$16 sps:$4 sm:$0xff]   ;;  %p2888_p2 = pnand %p2887_p7, %p3486_p10 }
  0x57   : > { %v2524_v17 = vld [vmem:[%s3145_s28 + $0x264] ss:$16 sps:$4 sm:$0xff]   ;;  %v2527_v19 = vld [vmem:[%s3145_s28 + $0x260] ss:$16 sps:$4 sm:$0xff]   ;;  %s2890_s21 = sshll.u32 %s2980_s15, 4  ;;  %s2891_s21 = int_to_ptr.vmem [resolvable:$false] %s2890_s21 }
  0x58   : > { %1550 = vmatpush1.bf16.msra.mxu0 %v2514_v10  ;;  %v2528_v20 = vld [vmem:[%s3145_s28 + $0x44] ss:$16 sps:$4 sm:$0xff]   ;;  %v2532_v22 = vld [vmem:[%s3145_s28 + $0x40] ss:$16 sps:$4 sm:$0xff]   ;;  %p2889_p1 = pneg %p2888_p2  ;;  %s2892_s30 = scalar_lea.vmem %s2891_s21, 2048 }
  0x59   : > { %1603 = vmatpush1.bf16.msra.mxu1 %v2515_v11  ;;  %1551 = vmatprep.subr.bf16.mxu0 %v2516_v12  ;;  %v2530_v21 = vld [vmem:[%s3145_s28 + $0x244] ss:$16 sps:$4 sm:$0xff]   ;;  %v2533_v23 = vld [vmem:[%s3145_s28 + $0x240] ss:$16 sps:$4 sm:$0xff]   ;;  %v2609_v11 = vld [vmem:[%s3145_s28 + $0xc8] ss:$16 sps:$4 sm:$0xff]   ;;  %p2893_p0 = scmp.lt.s32.totalorder %s3415_s10, %s2891_s21  ;;  %p2894_p3 = scmp.lt.s32.totalorder %s2892_s30, %s2886_s11 }
  0x5a   : > { %1604 = vmatprep.subr.bf16.mxu1 %v2518_v13  ;;  %v2534_v24 = vld [vmem:[%s3145_s28 + $0x24] ss:$16 sps:$4 sm:$0xff]   ;;  %v2538_v26 = vld [vmem:[%s3145_s28 + $0x20] ss:$16 sps:$4 sm:$0xff]   ;;  %v2617_v13 = vld [vmem:[%s3145_s28 + $0xac] ss:$16 sps:$4 sm:$0xff]  }
  0x5b   : > { %v2536_v25 = vld [vmem:[%s3145_s28 + $0x224] ss:$16 sps:$4 sm:$0xff]   ;;  %v2539_v27 = vld [vmem:[%s3145_s28 + $0x220] ss:$16 sps:$4 sm:$0xff]   ;;  %p2895_p4 = por %p2894_p3, %p2893_p0 }
  0x5c   : > { %1552 = vmatpush1.bf16.msra.mxu0 %v2520_v14  ;;  %v2540_v28 = vld [vmem:[%s3145_s28 + $0x4] ss:$16 sps:$4 sm:$0xff]   ;;  %v2544_v30 = vld [vmem:[%s3145_s28] ss:$16 sps:$4 sm:$0xff]  }
  0x5d   : > { %1605 = vmatpush1.bf16.msra.mxu1 %v2521_v15  ;;  %1553 = vmatprep.subr.bf16.mxu0 %v2522_v16  ;;  %v2542_v29 = vld [vmem:[%s3145_s28 + $0x204] ss:$16 sps:$4 sm:$0xff]   ;;  %v2545_v31 = vld [vmem:[%s3145_s28 + $0x200] ss:$16 sps:$4 sm:$0xff]   ;;  %v2615_v15 = vld [vmem:[%s3145_s28 + $0xa8] ss:$16 sps:$4 sm:$0xff]   ;;  %p2896_p6 = pnand %p2895_p4, %p2889_p1 }
  0x5e   : > { %1606 = vmatprep.subr.bf16.mxu1 %v2524_v17  ;;  %v2546_v32 = vld [vmem:[%s3145_s28 + $0x1e4] ss:$16 sps:$4 sm:$0xff]   ;;  %v2550_v34 = vld [vmem:[%s3145_s28 + $0x1e0] ss:$16 sps:$4 sm:$0xff]   ;;  %v2623_v17 = vld [vmem:[%s3145_s28 + $0x8c] ss:$16 sps:$4 sm:$0xff]  }
  0x5f   : > { %v2548_v33 = vld [vmem:[%s3145_s28 + $0x3e4] ss:$16 sps:$4 sm:$0xff]   ;;  %v2551_v35 = vld [vmem:[%s3145_s28 + $0x3e0] ss:$16 sps:$4 sm:$0xff]  }
  0x60   : > { %1554 = vmatpush1.bf16.msra.mxu0 %v2526_v18  ;;  %v2552_v36 = vld [vmem:[%s3145_s28 + $0x1c4] ss:$16 sps:$4 sm:$0xff]   ;;  %v2556_v38 = vld [vmem:[%s3145_s28 + $0x1c0] ss:$16 sps:$4 sm:$0xff]  }
  0x61   : > { %1607 = vmatpush1.bf16.msra.mxu1 %v2527_v19  ;;  %1555 = vmatprep.subr.bf16.mxu0 %v2528_v20  ;;  %v2554_v37 = vld [vmem:[%s3145_s28 + $0x3c4] ss:$16 sps:$4 sm:$0xff]   ;;  %v2557_v39 = vld [vmem:[%s3145_s28 + $0x3c0] ss:$16 sps:$4 sm:$0xff]   ;;  %v2621_v19 = vld [vmem:[%s3145_s28 + $0x88] ss:$16 sps:$4 sm:$0xff]  }
  0x62   : > { %1608 = vmatprep.subr.bf16.mxu1 %v2530_v21  ;;  %v2558_v40 = vld [vmem:[%s3145_s28 + $0x1a4] ss:$16 sps:$4 sm:$0xff]   ;;  %v2562_v42 = vld [vmem:[%s3145_s28 + $0x1a0] ss:$16 sps:$4 sm:$0xff]   ;;  %v2629_v21 = vld [vmem:[%s3145_s28 + $0x6c] ss:$16 sps:$4 sm:$0xff]  }
  0x63   : > { %v2560_v41 = vld [vmem:[%s3145_s28 + $0x3a4] ss:$16 sps:$4 sm:$0xff]   ;;  %v2563_v43 = vld [vmem:[%s3145_s28 + $0x3a0] ss:$16 sps:$4 sm:$0xff]  }
  0x64   : > { %1556 = vmatpush1.bf16.msra.mxu0 %v2532_v22  ;;  %v2564_v44 = vld [vmem:[%s3145_s28 + $0x184] ss:$16 sps:$4 sm:$0xff]   ;;  %v2568_v46 = vld [vmem:[%s3145_s28 + $0x180] ss:$16 sps:$4 sm:$0xff]  }
  0x65   : > { %1609 = vmatpush1.bf16.msra.mxu1 %v2533_v23  ;;  %1557 = vmatprep.subr.bf16.mxu0 %v2534_v24  ;;  %v2566_v45 = vld [vmem:[%s3145_s28 + $0x384] ss:$16 sps:$4 sm:$0xff]   ;;  %v2569_v47 = vld [vmem:[%s3145_s28 + $0x380] ss:$16 sps:$4 sm:$0xff]   ;;  %v2627_v23 = vld [vmem:[%s3145_s28 + $0x68] ss:$16 sps:$4 sm:$0xff]  }
  0x66   : > { %1610 = vmatprep.subr.bf16.mxu1 %v2536_v25  ;;  %v2570_v48 = vld [vmem:[%s3145_s28 + $0x164] ss:$16 sps:$4 sm:$0xff]   ;;  %v2574_v52 = vld [vmem:[%s3145_s28 + $0x160] ss:$16 sps:$4 sm:$0xff]   ;;  %v2635_v25 = vld [vmem:[%s3145_s28 + $0x4c] ss:$16 sps:$4 sm:$0xff]  }
  0x67   : > { %v3200_v49 = vld [vmem:[#allocation3 + $0x4] ss:$24 sps:$4 sm:$0xff]   ;;  %v2575_v53 = vld [vmem:[%s3145_s28 + $0x360] ss:$16 sps:$4 sm:$0xff]  }
  0x68   : > { %1558 = vmatpush1.bf16.msra.mxu0 %v2538_v26  ;;  %v2572_v50 = vld [vmem:[%s3145_s28 + $0x364] ss:$16 sps:$4 sm:$0xff]   ;;  %1577 = vmatprep.mubr.bf16.mxu0 %v3200_v49  ;;  %v2580_v56 = vld [vmem:[%s3145_s28 + $0x140] ss:$16 sps:$4 sm:$0xff]  }
  0x69   : > { %1611 = vmatpush1.bf16.msra.mxu1 %v2539_v27  ;;  %1559 = vmatprep.subr.bf16.mxu0 %v2540_v28  ;;  %v3203_v51 = vld [vmem:[#allocation3 + $0xc] ss:$24 sps:$4 sm:$0xff]   ;;  %v2581_v57 = vld [vmem:[%s3145_s28 + $0x340] ss:$16 sps:$4 sm:$0xff]   ;;  %v3251_v27 = vld [vmem:[#allocation3 + $0x3c] ss:$24 sps:$4 sm:$0xff]  }
  0x6a   : > { %1612 = vmatprep.subr.bf16.mxu1 %v2542_v29  ;;  %1630 = vmatprep.mubr.bf16.mxu1 %v3203_v51  ;;  %v2576_v54 = vld [vmem:[%s3145_s28 + $0x144] ss:$16 sps:$4 sm:$0xff]   ;;  %v2586_v60 = vld [vmem:[%s3145_s28 + $0x120] ss:$16 sps:$4 sm:$0xff]  }
  0x6b   : > { %v2578_v55 = vld [vmem:[%s3145_s28 + $0x344] ss:$16 sps:$4 sm:$0xff]   ;;  %v2587_v61 = vld [vmem:[%s3145_s28 + $0x320] ss:$16 sps:$4 sm:$0xff]  }
  0x6c   : > { %1560 = vmatpush1.bf16.msra.mxu0 %v2544_v30  ;;  %v2582_v58 = vld [vmem:[%s3145_s28 + $0x124] ss:$16 sps:$4 sm:$0xff]   ;;  %v2592_v0 = vld [vmem:[%s3145_s28 + $0x100] ss:$16 sps:$4 sm:$0xff]  }
  0x6d   : > { %1613 = vmatpush1.bf16.msra.mxu1 %v2545_v31  ;;  %1561 = vmatprep.subr.bf16.mxu0 %v2546_v32  ;;  %v2584_v59 = vld [vmem:[%s3145_s28 + $0x324] ss:$16 sps:$4 sm:$0xff]   ;;  %v2593_v1 = vld [vmem:[%s3145_s28 + $0x300] ss:$16 sps:$4 sm:$0xff]   ;;  %v2633_v31 = vld [vmem:[%s3145_s28 + $0x48] ss:$16 sps:$4 sm:$0xff]  }
  0x6e   : > { %1614 = vmatprep.subr.bf16.mxu1 %v2548_v33  ;;  %v2588_v62 = vld [vmem:[%s3145_s28 + $0x104] ss:$16 sps:$4 sm:$0xff]   ;;  %v3223_v4 = vld [vmem:[#allocation3] ss:$24 sps:$4 sm:$0xff]   ;;  %v3254_v28 = vld [vmem:[#allocation3 + $0x30] ss:$24 sps:$4 sm:$0xff]  }
  0x6f   : > { %v2590_v63 = vld [vmem:[%s3145_s28 + $0x304] ss:$16 sps:$4 sm:$0xff]   ;;  %v3225_v5 = vld [vmem:[#allocation3 + $0x8] ss:$24 sps:$4 sm:$0xff]   ;;  %v3256_v29 = vld [vmem:[#allocation3 + $0x38] ss:$24 sps:$4 sm:$0xff]  }
  0x70   : > { %1562 = vmatpush2.bf16.msra.mxu0 %v2550_v34  ;;  %v2602_v2 = vld [vmem:[%s3145_s28 + $0x4e4] ss:$16 sps:$4 sm:$0xff]   ;;  %v2600_v6 = vld [vmem:[%s3145_s28 + $0x4e0] ss:$16 sps:$4 sm:$0xff]   ;;  %v2641_v33 = vld [vmem:[%s3145_s28 + $0x2c] ss:$16 sps:$4 sm:$0xff]  }
  0x71   : > { %1615 = vmatpush2.bf16.msra.mxu1 %v2551_v35  ;;  %1563 = vmatprep.subr.bf16.mxu0 %v2552_v36  ;;  %v2608_v8 = vld [vmem:[%s3145_s28 + $0x4c4] ss:$16 sps:$4 sm:$0xff]   ;;  %v2606_v10 = vld [vmem:[%s3145_s28 + $0x4c0] ss:$16 sps:$4 sm:$0xff]   ;;  %v2639_v35 = vld [vmem:[%s3145_s28 + $0x28] ss:$16 sps:$4 sm:$0xff]  }
  0x72   : > { %1616 = vmatprep.subr.bf16.mxu1 %v2554_v37  ;;  %v2614_v12 = vld [vmem:[%s3145_s28 + $0x4a4] ss:$16 sps:$4 sm:$0xff]   ;;  %v2612_v14 = vld [vmem:[%s3145_s28 + $0x4a0] ss:$16 sps:$4 sm:$0xff]   ;;  %v2647_v37 = vld [vmem:[%s3145_s28 + $0xc] ss:$16 sps:$4 sm:$0xff]  }
  0x73   : > { %v2620_v16 = vld [vmem:[%s3145_s28 + $0x484] ss:$16 sps:$4 sm:$0xff]   ;;  %v2618_v18 = vld [vmem:[%s3145_s28 + $0x480] ss:$16 sps:$4 sm:$0xff]  }
  0x74   : > { %1564 = vmatpush2.bf16.msra.mxu0 %v2556_v38  ;;  %v2626_v20 = vld [vmem:[%s3145_s28 + $0x464] ss:$16 sps:$4 sm:$0xff]   ;;  %v2624_v22 = vld [vmem:[%s3145_s28 + $0x460] ss:$16 sps:$4 sm:$0xff]  }
  0x75   : > { %1617 = vmatpush2.bf16.msra.mxu1 %v2557_v39  ;;  %1565 = vmatprep.subr.bf16.mxu0 %v2558_v40  ;;  %v2632_v24 = vld [vmem:[%s3145_s28 + $0x444] ss:$16 sps:$4 sm:$0xff]   ;;  %v2630_v30 = vld [vmem:[%s3145_s28 + $0x440] ss:$16 sps:$4 sm:$0xff]   ;;  %v2645_v39 = vld [vmem:[%s3145_s28 + $0x8] ss:$16 sps:$4 sm:$0xff]  }
  0x76   : > { %1618 = vmatprep.subr.bf16.mxu1 %v2560_v41  ;;  %v3249_v26 = vld [vmem:[#allocation3 + $0x34] ss:$24 sps:$4 sm:$0xff]   ;;  %v2636_v34 = vld [vmem:[%s3145_s28 + $0x420] ss:$16 sps:$4 sm:$0xff]  }
  0x77   : > { %v2638_v32 = vld [vmem:[%s3145_s28 + $0x424] ss:$16 sps:$4 sm:$0xff]   ;;  %v2642_v38 = vld [vmem:[%s3145_s28 + $0x400] ss:$16 sps:$4 sm:$0xff]  }
  0x78   : > { %1566 = vmatpush2.bf16.msra.mxu0 %v2562_v42  ;;  %v2644_v36 = vld [vmem:[%s3145_s28 + $0x404] ss:$16 sps:$4 sm:$0xff]   ;;  %v2653_v42 = vld [vmem:[%s3145_s28 + $0x1ec] ss:$16 sps:$4 sm:$0xff]  }
  0x79   : > { %1619 = vmatpush2.bf16.msra.mxu1 %v2563_v43  ;;  %1567 = vmatprep.subr.bf16.mxu0 %v2564_v44  ;;  %v3272_v40 = vld [vmem:[#allocation3 + $0x14] ss:$24 sps:$4 sm:$0xff]   ;;  %v2648_v43 = vld [vmem:[%s3145_s28 + $0x5e0] ss:$16 sps:$4 sm:$0xff]   ;;  %v2651_v44 = vld [vmem:[%s3145_s28 + $0x1e8] ss:$16 sps:$4 sm:$0xff]  }
  0x7a   : > { %1620 = vmatprep.subr.bf16.mxu1 %v2566_v45  ;;  %v2650_v41 = vld [vmem:[%s3145_s28 + $0x5e4] ss:$16 sps:$4 sm:$0xff]  }
  0x7b   : > { %v2656_v45 = vld [vmem:[%s3145_s28 + $0x5c4] ss:$16 sps:$4 sm:$0xff]  }
  0x7c   : > { %1568 = vmatpush2.bf16.msra.mxu0 %v2568_v46  ;;  %v2659_v46 = vld [vmem:[%s3145_s28 + $0x1cc] ss:$16 sps:$4 sm:$0xff]  }
  0x7d   : > { %1621 = vmatpush2.bf16.msra.mxu1 %v2569_v47  ;;  %1569 = vmatprep.subr.bf16.mxu0 %v2570_v48  ;;  %v2654_v47 = vld [vmem:[%s3145_s28 + $0x5c0] ss:$16 sps:$4 sm:$0xff]   ;;  %v2657_v48 = vld [vmem:[%s3145_s28 + $0x1c8] ss:$16 sps:$4 sm:$0xff]  }
  0x7e   : > { %1622 = vmatprep.subr.bf16.mxu1 %v2572_v50  ;;  %v2665_v50 = vld [vmem:[%s3145_s28 + $0x1ac] ss:$16 sps:$4 sm:$0xff]  }
  0x80   : > { %1570 = vmatpush2.bf16.msra.mxu0 %v2574_v52  ;;  %v2660_v52 = vld [vmem:[%s3145_s28 + $0x5a0] ss:$16 sps:$4 sm:$0xff]  }
  0x81   : > { %1623 = vmatpush2.bf16.msra.mxu1 %v2575_v53  ;;  %1571 = vmatprep.subr.bf16.mxu0 %v2576_v54  ;;  %v2663_v53 = vld [vmem:[%s3145_s28 + $0x1a8] ss:$16 sps:$4 sm:$0xff]   ;;  %v2668_v54 = vld [vmem:[%s3145_s28 + $0x584] ss:$16 sps:$4 sm:$0xff]  }
  0x82   : > { %1624 = vmatprep.subr.bf16.mxu1 %v2578_v55  ;;  %v2671_v55 = vld [vmem:[%s3145_s28 + $0x18c] ss:$16 sps:$4 sm:$0xff]  }
  0x84   : > { %1572 = vmatpush2.bf16.msra.mxu0 %v2580_v56  ;;  %v2666_v56 = vld [vmem:[%s3145_s28 + $0x580] ss:$16 sps:$4 sm:$0xff]  }
  0x85   : > { %1625 = vmatpush2.bf16.msra.mxu1 %v2581_v57  ;;  %1573 = vmatprep.subr.bf16.mxu0 %v2582_v58  ;;  %v2669_v57 = vld [vmem:[%s3145_s28 + $0x188] ss:$16 sps:$4 sm:$0xff]   ;;  %v2674_v58 = vld [vmem:[%s3145_s28 + $0x564] ss:$16 sps:$4 sm:$0xff]  }
  0x86   : > { %1626 = vmatprep.subr.bf16.mxu1 %v2584_v59  ;;  %v2677_v59 = vld [vmem:[%s3145_s28 + $0x16c] ss:$16 sps:$4 sm:$0xff]  }
  0x88   : > { %1574 = vmatpush2.bf16.msra.mxu0 %v2586_v60  ;;  %v2672_v60 = vld [vmem:[%s3145_s28 + $0x560] ss:$16 sps:$4 sm:$0xff]  }
  0x89   : > { %1627 = vmatpush2.bf16.msra.mxu1 %v2587_v61  ;;  %1575 = vmatprep.subr.bf16.mxu0 %v2588_v62  ;;  %v2675_v61 = vld [vmem:[%s3145_s28 + $0x168] ss:$16 sps:$4 sm:$0xff]   ;;  %v2686_v62 = vld [vmem:[%s3145_s28 + $0x544] ss:$16 sps:$4 sm:$0xff]  }
  0x8a   : > { %1628 = vmatprep.subr.bf16.mxu1 %v2590_v63  ;;  %v2689_v63 = vld [vmem:[%s3145_s28 + $0x14c] ss:$16 sps:$4 sm:$0xff]  }
  0x8c   : > { %1576 = vmatpush2.bf16.msra.mxu0 %v2592_v0  ;;  %v2684_v0 = vld [vmem:[%s3145_s28 + $0x540] ss:$16 sps:$4 sm:$0xff]  }
  0x8d   : > { %1629 = vmatpush2.bf16.msra.mxu1 %v2593_v1  ;;  %1651 = vmatprep.subr.bf16.mxu0 %v2602_v2  ;;  %v2687_v1 = vld [vmem:[%s3145_s28 + $0x148] ss:$16 sps:$4 sm:$0xff]   ;;  %v2692_v2 = vld [vmem:[%s3145_s28 + $0x524] ss:$16 sps:$4 sm:$0xff]  }
  0x8e   : > { %1704 = vmatprep.subr.bf16.mxu1 %v2605_v3  ;;  %v2695_v3 = vld [vmem:[%s3145_s28 + $0x12c] ss:$16 sps:$4 sm:$0xff]  }
  0x8f   : > { %1578 = vmatmul.mubr.bf16.vlgmr.msra.gmra.mxu0 %v3223_v4 }
  0x90   : > { %1631 = vmatmul.mubr.bf16.vlgmr.msra.gmra.mxu1 %v3225_v5  ;;  %1652 = vmatpush1.bf16.msra.mxu0 %v2600_v6  ;;  %v2690_v6 = vld [vmem:[%s3145_s28 + $0x520] ss:$16 sps:$4 sm:$0xff]  }
  0x91   : > { %1705 = vmatpush1.bf16.msra.mxu1 %v2603_v7  ;;  %1653 = vmatprep.subr.bf16.mxu0 %v2608_v8  ;;  %v2693_v7 = vld [vmem:[%s3145_s28 + $0x128] ss:$16 sps:$4 sm:$0xff]   ;;  %v2698_v8 = vld [vmem:[%s3145_s28 + $0x504] ss:$16 sps:$4 sm:$0xff]  }
  0x92   : > { %1706 = vmatprep.subr.bf16.mxu1 %v2611_v9  ;;  %1587 = vmatprep.mubr.bf16.mxu0 %v3249_v26  ;;  %v2701_v9 = vld [vmem:[%s3145_s28 + $0x10c] ss:$16 sps:$4 sm:$0xff]  }
  0x93   : > { %1640 = vmatprep.mubr.bf16.mxu1 %v3251_v27 }
  0x94   : > { %1654 = vmatpush1.bf16.msra.mxu0 %v2606_v10  ;;  %v2696_v10 = vld [vmem:[%s3145_s28 + $0x500] ss:$16 sps:$4 sm:$0xff]  }
  0x95   : > { %1707 = vmatpush1.bf16.msra.mxu1 %v2609_v11  ;;  %1655 = vmatprep.subr.bf16.mxu0 %v2614_v12  ;;  %v2699_v11 = vld [vmem:[%s3145_s28 + $0x108] ss:$16 sps:$4 sm:$0xff]   ;;  %v2707_v12 = vld [vmem:[%s3145_s28 + $0x2ec] ss:$16 sps:$4 sm:$0xff]  }
  0x96   : > { %1708 = vmatprep.subr.bf16.mxu1 %v2617_v13  ;;  %v2710_v13 = vld [vmem:[%s3145_s28 + $0x4ec] ss:$16 sps:$4 sm:$0xff]  }
  0x97   : > { %1588 = vmatmul.mubr.bf16.gmra.mxu0 %v3254_v28 }
  0x98   : > { %1656 = vmatpush1.bf16.msra.mxu0 %v2612_v14  ;;  %1641 = vmatmul.mubr.bf16.gmra.mxu1 %v3256_v29  ;;  %v3309_v14 = vld [vmem:[#allocation3 + $0x10] ss:$24 sps:$4 sm:$0xff]  }
  0x99   : > { %1709 = vmatpush1.bf16.msra.mxu1 %v2615_v15  ;;  %1657 = vmatprep.subr.bf16.mxu0 %v2620_v16  ;;  %v2705_v15 = vld [vmem:[%s3145_s28 + $0x2e8] ss:$16 sps:$4 sm:$0xff]  }
  0x9a   : > { %1710 = vmatprep.subr.bf16.mxu1 %v2623_v17  ;;  %1736 = vmatprep.mubr.bf16.mxu1 %v3200_v49  ;;  %v2662_v49 = vld [vmem:[%s3145_s28 + $0x5a4] ss:$16 sps:$4 sm:$0xff]   ;;  %v2708_v16 = vld [vmem:[%s3145_s28 + $0x4e8] ss:$16 sps:$4 sm:$0xff]   ;;  %v2713_v17 = vld [vmem:[%s3145_s28 + $0x2cc] ss:$16 sps:$4 sm:$0xff]  }
  0x9b   : > { %1683 = vmatprep.mubr.bf16.mxu0 %v3272_v40 }
  0x9c   : > { %1658 = vmatpush1.bf16.msra.mxu0 %v2618_v18  ;;  %v2716_v18 = vld [vmem:[%s3145_s28 + $0x4cc] ss:$16 sps:$4 sm:$0xff]  }
  0x9d   : > { %1711 = vmatpush1.bf16.msra.mxu1 %v2621_v19  ;;  %1659 = vmatprep.subr.bf16.mxu0 %v2626_v20  ;;  %v3315_v19 = vld [vmem:[#allocation3 + $0x44] ss:$24 sps:$4 sm:$0xff]   ;;  %v2711_v20 = vld [vmem:[%s3145_s28 + $0x2c8] ss:$16 sps:$4 sm:$0xff]  }
  0x9e   : > { %1712 = vmatprep.subr.bf16.mxu1 %v2629_v21  ;;  %v2714_v21 = vld [vmem:[%s3145_s28 + $0x4c8] ss:$16 sps:$4 sm:$0xff]  }
  0xa0   : > { %1660 = vmatpush1.bf16.msra.mxu0 %v2624_v22  ;;  %v2722_v22 = vld [vmem:[%s3145_s28 + $0x2ac] ss:$16 sps:$4 sm:$0xff]  }
  0xa1   : > { %1713 = vmatpush1.bf16.msra.mxu1 %v2627_v23  ;;  %1661 = vmatprep.subr.bf16.mxu0 %v2632_v24  ;;  %v2725_v23 = vld [vmem:[%s3145_s28 + $0x4ac] ss:$16 sps:$4 sm:$0xff]   ;;  %v3325_v24 = vld [vmem:[#allocation3 + $0x40] ss:$24 sps:$4 sm:$0xff]  }
  0xa2   : > { %1714 = vmatprep.subr.bf16.mxu1 %v2635_v25  ;;  %v2723_v25 = vld [vmem:[%s3145_s28 + $0x4a8] ss:$16 sps:$4 sm:$0xff]  }
  0xa4   : > { %1662 = vmatpush1.bf16.msra.mxu0 %v2630_v30  ;;  %v2728_v30 = vld [vmem:[%s3145_s28 + $0x28c] ss:$16 sps:$4 sm:$0xff]  }
  0xa5   : > { %1715 = vmatpush1.bf16.msra.mxu1 %v2633_v31  ;;  %1663 = vmatprep.subr.bf16.mxu0 %v2638_v32  ;;  %v2731_v31 = vld [vmem:[%s3145_s28 + $0x48c] ss:$16 sps:$4 sm:$0xff]   ;;  %v2729_v32 = vld [vmem:[%s3145_s28 + $0x488] ss:$16 sps:$4 sm:$0xff]  }
  0xa6   : > { %1716 = vmatprep.subr.bf16.mxu1 %v2641_v33  ;;  %v2734_v33 = vld [vmem:[%s3145_s28 + $0x26c] ss:$16 sps:$4 sm:$0xff]  }
  0xa8   : > { %1664 = vmatpush1.bf16.msra.mxu0 %v2636_v34  ;;  %v2737_v34 = vld [vmem:[%s3145_s28 + $0x46c] ss:$16 sps:$4 sm:$0xff]  }
  0xa9   : > { %1717 = vmatpush1.bf16.msra.mxu1 %v2639_v35  ;;  %1665 = vmatprep.subr.bf16.mxu0 %v2644_v36  ;;  %v2735_v35 = vld [vmem:[%s3145_s28 + $0x468] ss:$16 sps:$4 sm:$0xff]   ;;  %v2740_v36 = vld [vmem:[%s3145_s28 + $0x24c] ss:$16 sps:$4 sm:$0xff]  }
  0xaa   : > { %1718 = vmatprep.subr.bf16.mxu1 %v2647_v37  ;;  %v2743_v37 = vld [vmem:[%s3145_s28 + $0x44c] ss:$16 sps:$4 sm:$0xff]  }
  0xac   : > { %1666 = vmatpush1.bf16.msra.mxu0 %v2642_v38  ;;  %v2738_v38 = vld [vmem:[%s3145_s28 + $0x248] ss:$16 sps:$4 sm:$0xff]  }
  0xad   : > { %1719 = vmatpush1.bf16.msra.mxu1 %v2645_v39  ;;  %1667 = vmatprep.subr.bf16.mxu0 %v2650_v41  ;;  %v2746_v39 = vld [vmem:[%s3145_s28 + $0x22c] ss:$16 sps:$4 sm:$0xff]   ;;  %v2744_v41 = vld [vmem:[%s3145_s28 + $0x228] ss:$16 sps:$4 sm:$0xff]  }
  0xae   : > { %1720 = vmatprep.subr.bf16.mxu1 %v2653_v42  ;;  %v2747_v42 = vld [vmem:[%s3145_s28 + $0x428] ss:$16 sps:$4 sm:$0xff]  }
  0xb0   : > { %1668 = vmatpush2.bf16.msra.mxu0 %v2648_v43  ;;  %v2752_v43 = vld [vmem:[%s3145_s28 + $0x20c] ss:$16 sps:$4 sm:$0xff]  }
  0xb1   : > { %1721 = vmatpush2.bf16.msra.mxu1 %v2651_v44  ;;  %1669 = vmatprep.subr.bf16.mxu0 %v2656_v45  ;;  %v2755_v44 = vld [vmem:[%s3145_s28 + $0x40c] ss:$16 sps:$4 sm:$0xff]   ;;  %v2750_v45 = vld [vmem:[%s3145_s28 + $0x208] ss:$16 sps:$4 sm:$0xff]  }
  0xb2   : > { %1722 = vmatprep.subr.bf16.mxu1 %v2659_v46  ;;  %v2753_v46 = vld [vmem:[%s3145_s28 + $0x408] ss:$16 sps:$4 sm:$0xff]  }
  0xb4   : > { %1670 = vmatpush2.bf16.msra.mxu0 %v2654_v47  ;;  %v2758_v47 = vld [vmem:[%s3145_s28 + $0x3ec] ss:$16 sps:$4 sm:$0xff]  }
  0xb5   : > { %1723 = vmatpush2.bf16.msra.mxu1 %v2657_v48  ;;  %1671 = vmatprep.subr.bf16.mxu0 %v2662_v49  ;;  %v2761_v48 = vld [vmem:[%s3145_s28 + $0x5ec] ss:$16 sps:$4 sm:$0xff]   ;;  %v2756_v49 = vld [vmem:[%s3145_s28 + $0x3e8] ss:$16 sps:$4 sm:$0xff]  }
  0xb6   : > { %1724 = vmatprep.subr.bf16.mxu1 %v2665_v50  ;;  %v2759_v50 = vld [vmem:[%s3145_s28 + $0x5e8] ss:$16 sps:$4 sm:$0xff]  }
  0xb8   : > { %1672 = vmatpush2.bf16.msra.mxu0 %v2660_v52  ;;  %v2764_v52 = vld [vmem:[%s3145_s28 + $0x3cc] ss:$16 sps:$4 sm:$0xff]  }
  0xb9   : > { %1725 = vmatpush2.bf16.msra.mxu1 %v2663_v53  ;;  %1673 = vmatprep.subr.bf16.mxu0 %v2668_v54  ;;  %v2767_v53 = vld [vmem:[%s3145_s28 + $0x5cc] ss:$16 sps:$4 sm:$0xff]   ;;  %v2762_v54 = vld [vmem:[%s3145_s28 + $0x3c8] ss:$16 sps:$4 sm:$0xff]  }
  0xba   : > { %1726 = vmatprep.subr.bf16.mxu1 %v2671_v55  ;;  %v2765_v55 = vld [vmem:[%s3145_s28 + $0x5c8] ss:$16 sps:$4 sm:$0xff]  }
  0xbc   : > { %1674 = vmatpush2.bf16.msra.mxu0 %v2666_v56  ;;  %v2770_v56 = vld [vmem:[%s3145_s28 + $0x3ac] ss:$16 sps:$4 sm:$0xff]  }
  0xbd   : > { %1727 = vmatpush2.bf16.msra.mxu1 %v2669_v57  ;;  %1675 = vmatprep.subr.bf16.mxu0 %v2674_v58  ;;  %v2773_v57 = vld [vmem:[%s3145_s28 + $0x5ac] ss:$16 sps:$4 sm:$0xff]   ;;  %v2768_v58 = vld [vmem:[%s3145_s28 + $0x3a8] ss:$16 sps:$4 sm:$0xff]  }
  0xbe   : > { %1728 = vmatprep.subr.bf16.mxu1 %v2677_v59  ;;  %v2771_v59 = vld [vmem:[%s3145_s28 + $0x5a8] ss:$16 sps:$4 sm:$0xff]  }
  0xc0   : > { %1676 = vmatpush2.bf16.msra.mxu0 %v2672_v60  ;;  %v2776_v60 = vld [vmem:[%s3145_s28 + $0x38c] ss:$16 sps:$4 sm:$0xff]  }
  0xc1   : > { %1729 = vmatpush2.bf16.msra.mxu1 %v2675_v61  ;;  %1677 = vmatprep.subr.bf16.mxu0 %v2686_v62  ;;  %v2779_v61 = vld [vmem:[%s3145_s28 + $0x58c] ss:$16 sps:$4 sm:$0xff]   ;;  %v2774_v62 = vld [vmem:[%s3145_s28 + $0x388] ss:$16 sps:$4 sm:$0xff]  }
  0xc2   : > { %1730 = vmatprep.subr.bf16.mxu1 %v2689_v63  ;;  %v2777_v63 = vld [vmem:[%s3145_s28 + $0x588] ss:$16 sps:$4 sm:$0xff]  }
  0xc4   : > { %1678 = vmatpush2.bf16.msra.mxu0 %v2684_v0  ;;  %v2782_v0 = vld [vmem:[%s3145_s28 + $0x36c] ss:$16 sps:$4 sm:$0xff]  }
  0xc5   : > { %1731 = vmatpush2.bf16.msra.mxu1 %v2687_v1  ;;  %1679 = vmatprep.subr.bf16.mxu0 %v2692_v2  ;;  %v2785_v1 = vld [vmem:[%s3145_s28 + $0x56c] ss:$16 sps:$4 sm:$0xff]   ;;  %v2780_v2 = vld [vmem:[%s3145_s28 + $0x368] ss:$16 sps:$4 sm:$0xff]  }
  0xc6   : > { %1732 = vmatprep.subr.bf16.mxu1 %v2695_v3  ;;  %v2783_v3 = vld [vmem:[%s3145_s28 + $0x568] ss:$16 sps:$4 sm:$0xff]  }
  0xc8   : > { %1680 = vmatpush2.bf16.msra.mxu0 %v2690_v6  ;;  %v2788_v6 = vld [vmem:[%s3145_s28 + $0x34c] ss:$16 sps:$4 sm:$0xff]  }
  0xc9   : > { %1733 = vmatpush2.bf16.msra.mxu1 %v2693_v7  ;;  %1681 = vmatprep.subr.bf16.mxu0 %v2698_v8  ;;  %v2791_v7 = vld [vmem:[%s3145_s28 + $0x54c] ss:$16 sps:$4 sm:$0xff]   ;;  %v2786_v8 = vld [vmem:[%s3145_s28 + $0x348] ss:$16 sps:$4 sm:$0xff]  }
  0xca   : > { %1734 = vmatprep.subr.bf16.mxu1 %v2701_v9  ;;  %v2789_v9 = vld [vmem:[%s3145_s28 + $0x548] ss:$16 sps:$4 sm:$0xff]  }
  0xcc   : > { %1682 = vmatpush2.bf16.msra.mxu0 %v2696_v10  ;;  %v2794_v10 = vld [vmem:[%s3145_s28 + $0x32c] ss:$16 sps:$4 sm:$0xff]  }
  0xcd   : > { %1735 = vmatpush2.bf16.msra.mxu1 %v2699_v11  ;;  %1757 = vmatprep.subr.bf16.mxu0 %v2707_v12  ;;  %v2797_v11 = vld [vmem:[%s3145_s28 + $0x52c] ss:$16 sps:$4 sm:$0xff]   ;;  %v2792_v12 = vld [vmem:[%s3145_s28 + $0x328] ss:$16 sps:$4 sm:$0xff]  }
  0xce   : > { %1810 = vmatprep.subr.bf16.mxu1 %v2710_v13  ;;  %v2795_v13 = vld [vmem:[%s3145_s28 + $0x528] ss:$16 sps:$4 sm:$0xff]  }
  0xcf   : > { %1684 = vmatmul.mubr.bf16.vlgmr.msra.gmra.mxu0 %v3309_v14 }
  0xd0   : > { %1737 = vmatmul.mubr.bf16.vlgmr.msra.gmra.mxu1 %v3223_v4  ;;  %1758 = vmatpush1.bf16.msra.mxu0 %v2705_v15  ;;  %v2720_v4 = vld [vmem:[%s3145_s28 + $0x2a8] ss:$16 sps:$4 sm:$0xff]   ;;  %v2800_v15 = vld [vmem:[%s3145_s28 + $0x30c] ss:$16 sps:$4 sm:$0xff]  }
  0xd1   : > { %1811 = vmatpush1.bf16.msra.mxu1 %v2708_v16  ;;  %1759 = vmatprep.subr.bf16.mxu0 %v2713_v17  ;;  %v2803_v16 = vld [vmem:[%s3145_s28 + $0x50c] ss:$16 sps:$4 sm:$0xff]   ;;  %v2798_v17 = vld [vmem:[%s3145_s28 + $0x308] ss:$16 sps:$4 sm:$0xff]  }
  0xd2   : > { %1812 = vmatprep.subr.bf16.mxu1 %v2716_v18  ;;  %1693 = vmatprep.mubr.bf16.mxu0 %v3315_v19  ;;  %v2801_v18 = vld [vmem:[%s3145_s28 + $0x508] ss:$16 sps:$4 sm:$0xff]  }
  0xd3   : > { %1746 = vmatprep.mubr.bf16.mxu1 %v3249_v26  ;;  %v2726_v26 = vld [vmem:[%s3145_s28 + $0x288] ss:$16 sps:$4 sm:$0xff]  }
  0xd4   : > { %1760 = vmatpush1.bf16.msra.mxu0 %v2711_v20 }
  0xd5   : > { %1813 = vmatpush1.bf16.msra.mxu1 %v2714_v21  ;;  %1761 = vmatprep.subr.bf16.mxu0 %v2722_v22 }
  0xd6   : > { %1814 = vmatprep.subr.bf16.mxu1 %v2725_v23 }
  0xd7   : > { %1694 = vmatmul.mubr.bf16.gmra.mxu0 %v3325_v24 }
  0xd8   : > { %1747 = vmatmul.mubr.bf16.gmra.mxu1 %v3254_v28  ;;  %1762 = vmatpush1.bf16.msra.mxu0 %v2720_v4  ;;  %v2732_v28 = vld [vmem:[%s3145_s28 + $0x268] ss:$16 sps:$4 sm:$0xff]  }
  0xd9   : > { %1815 = vmatpush1.bf16.msra.mxu1 %v2723_v25  ;;  %1763 = vmatprep.subr.bf16.mxu0 %v2728_v30  ;;  %v1916_v30 = vlaneseq }
  0xda   : > { %1816 = vmatprep.subr.bf16.mxu1 %v2731_v31  ;;  %1789 = vmatprep.mubr.bf16.mxu0 %v3203_v51  ;;  %v2741_v51 = vld [vmem:[%s3145_s28 + $0x448] ss:$16 sps:$4 sm:$0xff]  }
  0xdb   : > { %1842 = vmatprep.mubr.bf16.mxu1 %v3272_v40  ;;  %v2749_v40 = vld [vmem:[%s3145_s28 + $0x42c] ss:$16 sps:$4 sm:$0xff]  }
  0xdc   : > { %1764 = vmatpush1.bf16.msra.mxu0 %v2726_v26 }
  0xdd   : > { %1817 = vmatpush1.bf16.msra.mxu1 %v2729_v32  ;;  %1765 = vmatprep.subr.bf16.mxu0 %v2734_v33 }
  0xde   : > { %1818 = vmatprep.subr.bf16.mxu1 %v2737_v34 }
  0xe0   : > { %1766 = vmatpush1.bf16.msra.mxu0 %v2732_v28 }
  0xe1   : > { %1819 = vmatpush1.bf16.msra.mxu1 %v2735_v35  ;;  %1767 = vmatprep.subr.bf16.mxu0 %v2740_v36 }
  0xe2   : > { %1820 = vmatprep.subr.bf16.mxu1 %v2743_v37 }
  0xe4   : > { %1768 = vmatpush1.bf16.msra.mxu0 %v2738_v38 }
  0xe5   : > { %1821 = vmatpush1.bf16.msra.mxu1 %v2741_v51  ;;  %1769 = vmatprep.subr.bf16.mxu0 %v2746_v39 }
  0xe6   : > { %1822 = vmatprep.subr.bf16.mxu1 %v2749_v40 }
  0xe8   : > { %1770 = vmatpush1.bf16.msra.mxu0 %v2744_v41 }
  0xe9   : > { %1823 = vmatpush1.bf16.msra.mxu1 %v2747_v42  ;;  %1771 = vmatprep.subr.bf16.mxu0 %v2752_v43 }
  0xea   : > { %1824 = vmatprep.subr.bf16.mxu1 %v2755_v44 }
  0xec   : > { %1772 = vmatpush1.bf16.msra.mxu0 %v2750_v45 }
  0xed   : > { %1825 = vmatpush1.bf16.msra.mxu1 %v2753_v46  ;;  %1773 = vmatprep.subr.bf16.mxu0 %v2758_v47 }
  0xee   : > { %1826 = vmatprep.subr.bf16.mxu1 %v2761_v48 }
  0xf0   : > { %1774 = vmatpush2.bf16.msra.mxu0 %v2756_v49 }
  0xf1   : > { %1827 = vmatpush2.bf16.msra.mxu1 %v2759_v50  ;;  %1775 = vmatprep.subr.bf16.mxu0 %v2764_v52 }
  0xf2   : > { %1828 = vmatprep.subr.bf16.mxu1 %v2767_v53 }
  0xf4   : > { %1776 = vmatpush2.bf16.msra.mxu0 %v2762_v54 }
  0xf5   : > { %1829 = vmatpush2.bf16.msra.mxu1 %v2765_v55  ;;  %1777 = vmatprep.subr.bf16.mxu0 %v2770_v56 }
  0xf6   : > { %1830 = vmatprep.subr.bf16.mxu1 %v2773_v57 }
  0xf8   : > { %1778 = vmatpush2.bf16.msra.mxu0 %v2768_v58 }
  0xf9   : > { %1831 = vmatpush2.bf16.msra.mxu1 %v2771_v59  ;;  %1779 = vmatprep.subr.bf16.mxu0 %v2776_v60 }
  0xfa   : > { %1832 = vmatprep.subr.bf16.mxu1 %v2779_v61 }
  0xfc   : > { %1780 = vmatpush2.bf16.msra.mxu0 %v2774_v62 }
  0xfd   : > { %1833 = vmatpush2.bf16.msra.mxu1 %v2777_v63  ;;  %1781 = vmatprep.subr.bf16.mxu0 %v2782_v0 }
  0xfe   : > { %1834 = vmatprep.subr.bf16.mxu1 %v2785_v1 }
 0x100   : > { %1782 = vmatpush2.bf16.msra.mxu0 %v2780_v2 }
 0x101   : > { %1835 = vmatpush2.bf16.msra.mxu1 %v2783_v3  ;;  %1783 = vmatprep.subr.bf16.mxu0 %v2788_v6 }
 0x102   : > { %1836 = vmatprep.subr.bf16.mxu1 %v2791_v7 }
 0x104   : > { %1784 = vmatpush2.bf16.msra.mxu0 %v2786_v8 }
 0x105   : > { %1837 = vmatpush2.bf16.msra.mxu1 %v2789_v9  ;;  %1785 = vmatprep.subr.bf16.mxu0 %v2794_v10 }
 0x106   : > { %1838 = vmatprep.subr.bf16.mxu1 %v2797_v11 }
 0x108   : > { %1786 = vmatpush2.bf16.msra.mxu0 %v2792_v12 }
 0x109   : > { %1839 = vmatpush2.bf16.msra.mxu1 %v2795_v13  ;;  %1787 = vmatprep.subr.bf16.mxu0 %v2800_v15 }
 0x10a   : > { %1840 = vmatprep.subr.bf16.mxu1 %v2803_v16 }
 0x10c   : > { %1788 = vmatpush2.bf16.msra.mxu0 %v2798_v17 }
 0x10d   : > { %1841 = vmatpush2.bf16.msra.mxu1 %v2801_v18 }
 0x10f   : > { %1790 = vmatmul.mubr.bf16.vlgmr.msra.gmra.mxu0 %v3225_v5  ;;  %v3392_v5 = vshrl.u32 %v1916_v30, 7 }
 0x110   : > { %1843 = vmatmul.mubr.bf16.vlgmr.msra.gmra.mxu1 %v3309_v14  ;;  %1799 = vmatprep.mubr.bf16.mxu0 %v3251_v27 }
 0x111   : > { %1852 = vmatprep.mubr.bf16.mxu1 %v3315_v19  ;;  %v1918_v19 = vsub.s32 0, %v3392_v5 }
 0x117   : > { %1800 = vmatmul.mubr.bf16.gmra.mxu0 %v3256_v29  ;;  %v3395_v29 = vld [vmem:[%s250_s20] sm:$0xf] }
 0x118   : > { %1853 = vmatmul.mubr.bf16.gmra.mxu1 %v3325_v24  ;;  %v1922_v24 = vsub.s32 1, %v3392_v5  ;;  %v1919_v35 = vrot.slane %v3395_v29, %v1918_v19 }
 0x11a   : > { %v1923_v51 = vrot.slane %v3395_v29, %v1922_v24 }
 0x14f   : > { %v1579_v20 = vpop.f32.mrf.mxu0 }
 0x150   : > { %v1632_v23 = vpop.f32.mrf.mxu1 }
 0x151   : > { %v1581_v21 = vpop.f32.mrf.mxu0  ;;  %v1633_v28 = vadd.f32 %v1632_v23, %v1579_v20 }
 0x152   : > { %v1634_v31 = vpop.f32.mrf.mxu1 }
 0x153   : > { %v1583_v22 = vpop.f32.mrf.mxu0  ;;  %v1635_v37 = vadd.f32 %v1634_v31, %v1581_v21 }
 0x154   : > { %v1636_v14 = vpop.f32.mrf.mxu1 }
 0x155   : > { %v1585_v4 = vpop.f32.mrf.mxu0  ;;  %v1637_v41 = vadd.f32 %v1636_v14, %v1583_v22 }
 0x156   : > { %v1638_v32 = vpop.f32.mrf.mxu1 }
 0x157   : > { %v1589_v25 = vpop.f32.mrf.mxu0  ;;  %v1639_v45 = vadd.f32 %v1638_v32, %v1585_v4  ;;  %v1930_v32 = vsub.s32 3, %v3392_v5 }
 0x158   : > { %v1642_v33 = vpop.f32.mrf.mxu1 }
 0x159   : > { %v1591_v26 = vpop.f32.mrf.mxu0  ;;  %v1643_v48 = vadd.f32 %v1642_v33, %v1589_v25 }
 0x15a   : > { %v1644_v39 = vpop.f32.mrf.mxu1 }
 0x15b   : > { %v1593_v27 = vpop.f32.mrf.mxu0  ;;  %v1645_v57 = vadd.f32 %v1644_v39, %v1591_v26 }
 0x15c   : > { %v1646_v49 = vpop.f32.mrf.mxu1 }
 0x15d   : > { %v1595_v34 = vpop.f32.mrf.mxu0  ;;  %v1647_v61 = vadd.f32 %v1646_v49, %v1593_v27  ;;  %v1926_v27 = vsub.s32 2, %v3392_v5 }
 0x15e   : > { %v1648_v62 = vpop.f32.mrf.mxu1 }
 0x15f   : > { %v1649_v7 = vadd.f32 %v1648_v62, %v1595_v34 }
 0x18f   : > { %v1685_v36 = vpop.f32.mrf.mxu0 }
 0x190   : > { %v1686_v38 = vadd.f32 %v1685_v36, %v1633_v28  ;;  %v1738_v23 = vpop.f32.mrf.mxu1  ;;  %v1927_v28 = vrot.slane %v3395_v29, %v1926_v27 }
 0x191   : > { %v1687_v40 = vpop.f32.mrf.mxu0 }
 0x192   : > { %v1936_v42 = vadd.f32 %v1919_v35, %v1686_v38  ;;  %v1688_v43 = vadd.f32 %v1687_v40, %v1635_v37  ;;  %v1740_v4 = vpop.f32.mrf.mxu1 }
 0x193   : > { %v1689_v44 = vpop.f32.mrf.mxu0 }
 0x194   : > { %v1937_v46 = vadd.f32 %v1923_v51, %v1688_v43  ;;  %v1690_v47 = vadd.f32 %v1689_v44, %v1637_v41  ;;  %v1952_v52 = vmax.f32 %v1936_v42, 0.0  ;;  %v1742_v25 = vpop.f32.mrf.mxu1 }
 0x195   : > { %v1691_v50 = vpop.f32.mrf.mxu0 }
 0x196   : > { %v1953_v53 = vmax.f32 %v1937_v46, 0.0  ;;  %v1940_v54 = vadd.f32 %v1919_v35, %v1690_v47  ;;  %v1692_v55 = vadd.f32 %v1691_v50, %v1639_v45  ;;  %v1744_v30 = vpop.f32.mrf.mxu1 }
 0x197   : > { %v1695_v56 = vpop.f32.mrf.mxu0 }
 0x198   : > { %v2401_v58 = vpack.c.bf16 %v1953_v53, %v1952_v52  ;;  %v1941_v59 = vadd.f32 %v1923_v51, %v1692_v55  ;;  %v1696_v60 = vadd.f32 %v1695_v56, %v1643_v48  ;;  %v1956_v0 = vmax.f32 %v1940_v54, 0.0  ;;  %v1748_v31 = vpop.f32.mrf.mxu1 }
 0x199   : > { %v1697_v63 = vpop.f32.mrf.mxu0 }
 0x19a   : > { %2016 = vst [vmem:[%s3401_s27] sm:$0xff] %v2401_v58  ;;  %v1957_v1 = vmax.f32 %v1941_v59, 0.0  ;;  %v1944_v2 = vadd.f32 %v1919_v35, %v1696_v60  ;;  %v1698_v3 = vadd.f32 %v1697_v63, %v1645_v57  ;;  %v1750_v26 = vpop.f32.mrf.mxu1 }
 0x19b   : > { %v1699_v6 = vpop.f32.mrf.mxu0 }
 0x19c   : > { %v2403_v8 = vpack.c.bf16 %v1957_v1, %v1956_v0  ;;  %v1945_v9 = vadd.f32 %v1923_v51, %v1698_v3  ;;  %v1700_v10 = vadd.f32 %v1699_v6, %v1647_v61  ;;  %v1960_v12 = vmax.f32 %v1944_v2, 0.0  ;;  %v1752_v14 = vpop.f32.mrf.mxu1 }
 0x19d   : > { %v1701_v11 = vpop.f32.mrf.mxu0 }
 0x19e   : > { %2018 = vst [vmem:[%s3401_s27 + $0x10] sm:$0xff] %v2403_v8  ;;  %v1961_v13 = vmax.f32 %v1945_v9, 0.0  ;;  %v1948_v15 = vadd.f32 %v1919_v35, %v1700_v10  ;;  %v1702_v16 = vadd.f32 %v1701_v11, %v1649_v7  ;;  %v1754_v19 = vpop.f32.mrf.mxu1 }
 0x1a0   : > { %v2405_v17 = vpack.c.bf16 %v1961_v13, %v1960_v12  ;;  %v1949_v18 = vadd.f32 %v1923_v51, %v1702_v16  ;;  %v1964_v20 = vmax.f32 %v1948_v15, 0.0  ;;  %v1931_v51 = vrot.slane %v3395_v29, %v1930_v32 }
 0x1a2   : > { %2020 = vst [vmem:[%s3401_s27 + $0x20] sm:$0xff] %v2405_v17  ;;  %v1965_v21 = vmax.f32 %v1949_v18, 0.0 }
 0x1a4   : > { %v2407_v22 = vpack.c.bf16 %v1965_v21, %v1964_v20 }
 0x1a6   : > { %2022 = vst [vmem:[%s3401_s27 + $0x30] sm:$0xff] %v2407_v22 }
 0x1cf   : > { %v1791_v24 = vpop.f32.mrf.mxu0 }
 0x1d0   : > { %v1844_v33 = vpop.f32.mrf.mxu1  ;;  %v1792_v34 = vadd.f32 %v1791_v24, %v1738_v23 }
 0x1d1   : > { %v1793_v35 = vpop.f32.mrf.mxu0 }
 0x1d2   : > { %v1846_v36 = vpop.f32.mrf.mxu1  ;;  %v1845_v37 = vadd.f32 %v1844_v33, %v1792_v34  ;;  %v1794_v38 = vadd.f32 %v1793_v35, %v1740_v4 }
 0x1d3   : > { %v1795_v39 = vpop.f32.mrf.mxu0 }
 0x1d4   : > { %v1848_v40 = vpop.f32.mrf.mxu1  ;;  %v1938_v41 = vadd.f32 %v1927_v28, %v1845_v37  ;;  %v1847_v42 = vadd.f32 %v1846_v36, %v1794_v38  ;;  %v1796_v43 = vadd.f32 %v1795_v39, %v1742_v25 }
 0x1d5   : > { %v1797_v44 = vpop.f32.mrf.mxu0 }
 0x1d6   : > { %v1850_v45 = vpop.f32.mrf.mxu1  ;;  %v1939_v46 = vadd.f32 %v1931_v51, %v1847_v42  ;;  %v1849_v5 = vadd.f32 %v1848_v40, %v1796_v43  ;;  %v1798_v47 = vadd.f32 %v1797_v44, %v1744_v30  ;;  %v1954_v48 = vmax.f32 %v1938_v41, 0.0 }
 0x1d7   : > { %v1801_v49 = vpop.f32.mrf.mxu0 }
 0x1d8   : > { %v1854_v50 = vpop.f32.mrf.mxu1  ;;  %v1955_v52 = vmax.f32 %v1939_v46, 0.0  ;;  %v1942_v53 = vadd.f32 %v1927_v28, %v1849_v5  ;;  %v1851_v54 = vadd.f32 %v1850_v45, %v1798_v47  ;;  %v1802_v55 = vadd.f32 %v1801_v49, %v1748_v31 }
 0x1d9   : > { %v1803_v56 = vpop.f32.mrf.mxu0 }
 0x1da   : > { %v1856_v29 = vpop.f32.mrf.mxu1  ;;  %v2402_v57 = vpack.c.bf16 %v1955_v52, %v1954_v48  ;;  %v1943_v58 = vadd.f32 %v1931_v51, %v1851_v54  ;;  %v1855_v59 = vadd.f32 %v1854_v50, %v1802_v55  ;;  %v1804_v60 = vadd.f32 %v1803_v56, %v1750_v26 }
 0x1db   : > { %v1805_v61 = vpop.f32.mrf.mxu0  ;;  %v1958_v63 = vmax.f32 %v1942_v53, 0.0 }
 0x1dc   : > { %v1858_v62 = vpop.f32.mrf.mxu1  ;;  %2017 = vst [vmem:[%s3401_s27 + $0x8] sm:$0xff] %v2402_v57  ;;  %v1959_v0 = vmax.f32 %v1943_v58, 0.0  ;;  %v1806_v1 = vadd.f32 %v1805_v61, %v1752_v14  ;;  %v1946_v2 = vadd.f32 %v1927_v28, %v1855_v59  ;;  %v1857_v3 = vadd.f32 %v1856_v29, %v1804_v60 }
 0x1dd   : > { %v1807_v6 = vpop.f32.mrf.mxu0 }
 0x1de   : > { %v2404_v7 = vpack.c.bf16 %v1959_v0, %v1958_v63  ;;  %v1859_v8 = vadd.f32 %v1858_v62, %v1806_v1  ;;  %v1808_v9 = vadd.f32 %v1807_v6, %v1754_v19  ;;  %v1947_v10 = vadd.f32 %v1931_v51, %v1857_v3  ;;  %v1860_v11 = vpop.f32.mrf.mxu1 }
 0x1df   : > { %v1962_v15 = vmax.f32 %v1946_v2, 0.0 }
 0x1e0   : > { %2019 = vst [vmem:[%s3401_s27 + $0x18] sm:$0xff] %v2404_v7  ;;  %v1950_v12 = vadd.f32 %v1927_v28, %v1859_v8  ;;  %v1861_v13 = vadd.f32 %v1860_v11, %v1808_v9  ;;  %v1963_v16 = vmax.f32 %v1947_v10, 0.0 }
 0x1e2   : > { %v1951_v17 = vadd.f32 %v1931_v51, %v1861_v13  ;;  %v2406_v18 = vpack.c.bf16 %v1963_v16, %v1962_v15  ;;  %v1966_v20 = vmax.f32 %v1950_v12, 0.0 }
 0x1e4   : > { %v1967_v21 = vmax.f32 %v1951_v17, 0.0  ;;  %2021 = vst [vmem:[%s3401_s27 + $0x28] sm:$0xff] %v2406_v18 }
 0x1e6   : > { %v2408_v22 = vpack.c.bf16 %v1967_v21, %v1966_v20 }
 0x1e8   : > { %2023 = vst [vmem:[%s3401_s27 + $0x38] sm:$0xff] %v2408_v22 }
 0x1e9   : > { %2899 = shalt.err (!%p2896_p6)
}
 0x1ea   : > { %s2900_s29 = scalar_lea.hbm %s3421_s8, 1024  ;;  %s2904_s5 = scalar_lea.hbm %s3473_s3, 2048 }
 0x1eb   : > { %p2901_p8 = scmp.ne.s32.totalorder %s3421_s8, %s2900_s29  ;;  %p2905_p11 = scmp.lt.s32.totalorder %s3421_s8, %s3473_s3 }
 0x1ec   : > { %p2906_p12 = scmp.lt.s32.totalorder %s2904_s5, %s2900_s29 }
 0x1ed   : > { %p2902_p5 = pnand %p2901_p8, %p3486_p10 }
 0x1ee   : > { %p2907_p13 = por %p2906_p12, %p2905_p11 }
 0x1ef   : > { %p2903_p9 = pneg %p2902_p5 }
 0x1f1   : > { %p2908_p7 = pnand %p2907_p13, %p2903_p9 }
 0x1f3   : > { %2911 = shalt.err (!%p2908_p7)
}
 0x1f4   : > { %s2981_s27 = smov 256   ;;  %s2982_s19 = smov 512  }
 0x1f5   : > { %s2983_s6 = smov 16  }
 0x1f6   : > { %2420 = dma.vmem_to_hbm [thread:$0]  (%p3486_p10), %s3415_s10, 1024, %s3421_s8, %s2025_s9, %s2981_s27, %s2982_s19, %s2983_s6  }
 0x1f7 PF: > { %s2056_s4 = sand.u32 1, %s2950_s12   ;;  %p3487_p2 = scmp.ne.s32.totalorder %s3480_s26, 0 }
 0x1f8   : > { %p3488_p1 = scmp.ge.s32.totalorder %s2970_s17, 2  ;;  %s2057_s11 = scalar_lea.sflag [#allocation5], %s2056_s4 }
 0x1fa   : > { %p2434_p0 = pnand %p3488_p1, %p3487_p2 }
 0x1fc   : > { %p2435_p3 = pneg %p2434_p0 }
 0x1fe   : > { %2945 = dma.done.wait (%p2435_p3), %s2057_s11, 1024  }
 0x1ff   : > { %2947 = vsyncadd (%p2435_p3), %s2057_s11, 4294966272  ;;  %s20_s17 = sadd.s32 1, %s2970_s17   ;;  %s3489_s12 = smov %s2954_s13 }
 0x200   : > { %p17_p4 = scmp.ge.s32.totalorder %s20_s17, 4   ;;  %s3490_s13 = smov %s2958_s14 }
 0x201   : > { %s3491_s14 = smov %s3052_s24  ;;  %s3492_s15 = smov %s2966_s16 }
 0x202   : > { %s3493_s16 = smov %s3495_s18  ;;  %19 = sbr.rel (!%p17_p4) target bundleno = 7 (0x7), region = 102 }
 0x207   :  { %2062 = vsyncpa [#allocation4], 1 }
 0x208   :  { %2064 = vsyncpa [#allocation4 + $0x1], 1 }
 0x209   :  { %2065 = vsyncpa [#allocation7], 1 }
 0x20a   :  { %2067 = vsyncpa [#allocation7 + $0x1], 1 }
 0x20b   :  { %2068 = vsyncpa [#allocation5], 1 }
 0x20c   :  { %2070 = vsyncpa [#allocation5 + $0x1], 1 }

</bundles_post_ra>
